<compile_context>
chip_gen: v5e
topology: v5e:2x2
jax: 0.10.0
libtpu: 0.0.40
codegen_flags: <defaults>
</compile_context>

<pallas_src>
import jax
import jax.numpy as jnp
from jax import lax
from jax.experimental import pallas as pl
from jax.experimental.pallas import tpu as pltpu


def _autoencoder_kernel(x_ref, w_ref, b_ref, o_ref):
    x = x_ref[...]          # (tile_batch, input_dim)
    w = w_ref[...]          # (latent, input_dim), nn.Linear layout
    b = b_ref[...]          # (1, latent), f32 (cast hoisted to the wrapper)

    # Encoder: x @ W^T + b. Transpose folded into the MXU contraction
    # (contract x dim 1 with w dim 1) -- no XLU transpose, no W^T copy.
    latent = lax.dot_general(
        x, w,
        dimension_numbers=(((1,), (1,)), ((), ())),
        preferred_element_type=jnp.float32,
    ) + b

    # Decoder: latent @ W (tied weights, no bias). Keep f32 accumulation for
    # f32 weights; only downcast the latent for low-precision W.
    lat_in = latent if w.dtype == jnp.float32 else latent.astype(w.dtype)
    recon = lax.dot_general(
        lat_in, w,
        dimension_numbers=(((1,), (0,)), ((), ())),
        preferred_element_type=jnp.float32,
    )
    o_ref[...] = recon.astype(o_ref.dtype)


def _row_align(itemsize):
    # Sublane packing: 8 rows per vreg tile for 32-bit, 16 for 16-bit, 32 for 8-bit.
    return {4: 8, 2: 16, 1: 32}.get(int(itemsize), 8)


def _pick_tile_batch(batch, input_dim, itemsize, row_align, *,
                     max_rows=2048, tile_bytes_budget=4 << 20):
    """Largest row-aligned tile with an x-tile <= ~4 MiB and <= max_rows rows.
    Small batches get a single tile covering the (row-aligned) padded batch."""
    cap = max(row_align, tile_bytes_budget // max(1, input_dim * itemsize))
    cap = min(cap, max_rows)
    cap -= cap % row_align
    cap = max(cap, row_align)
    padded_small = -(-batch // row_align) * row_align   # round batch up
    return min(cap, padded_small)


def _physical_vmem_bytes():
    try:
        return int(pltpu.get_tpu_info().vmem_capacity_bytes)
    except Exception:
        return 64 * 2**20   # conservative fallback (v7x per-TensorCore)


def autoencoder_forward(x, w, b, *, tile_batch=None):
    """x: (B, input_dim), w: (latent, input_dim), b: (latent,) -> (B, input_dim)."""
    B, input_dim = x.shape
    latent, in_dim_w = w.shape
    assert in_dim_w == input_dim
    assert b.shape == (latent,)

    row_align = _row_align(x.dtype.itemsize)
    if tile_batch is None:
        tile_batch = _pick_tile_batch(B, input_dim, x.dtype.itemsize, row_align)
    assert tile_batch % row_align == 0, "tile_batch must respect dtype row packing"

    # cdiv + zero-pad instead of requiring tile_batch | B (stable tiling for
    # awkward / prime batch sizes); padded rows are sliced off at the end.
    num_tiles = pl.cdiv(B, tile_batch)
    padded_B = num_tiles * tile_batch
    x_p = x if padded_B == B else jnp.pad(x, ((0, padded_B - B), (0, 0)))

    # Hoist the bias reshape/cast out of the kernel: (1, latent) f32 in VMEM.
    b2d = b.reshape(1, latent).astype(jnp.float32)

    grid = (num_tiles,)

    # VMEM accounting: double-buffered x/out tiles + double-buffered W/bias,
    # plus headroom for the f32 latent/recon temporaries and compiler scratch.
    x_bytes = tile_batch * input_dim * x.dtype.itemsize
    o_bytes = tile_batch * input_dim * x.dtype.itemsize
    w_bytes = latent * input_dim * w.dtype.itemsize
    b_bytes = latent * 4
    needed = 2 * (x_bytes + o_bytes) + 2 * (w_bytes + b_bytes)
    scratch = tile_batch * (latent + input_dim) * 4 + (4 << 20)

    vmem_cap = int(0.75 * _physical_vmem_bytes())     # 48 MiB on v7x, ~96 MiB on v5e/v6e
    vmem_limit = int(min(max(needed + scratch, 32 << 20), vmem_cap))
    assert needed + tile_batch * (latent + input_dim) * 4 <= vmem_limit, (
        "W/bias + tile buffers exceed the VMEM budget; tile input_dim "
        "(see TODO) or shrink tile_batch")

    cost = pl.CostEstimate(
        flops=4 * padded_B * input_dim * latent,       # two matmuls, 2*B*D*L each
        transcendentals=0,
        bytes_accessed=(2 * padded_B * input_dim * x.dtype.itemsize
                        + w_bytes + b_bytes),
    )

    out = pl.pallas_call(
        _autoencoder_kernel,
        out_shape=jax.ShapeDtypeStruct((padded_B, input_dim), x.dtype),
        grid_spec=pltpu.PrefetchScalarGridSpec(
            num_scalar_prefetch=0,
            grid=grid,
            in_specs=[
                pl.BlockSpec((tile_batch, input_dim), lambda i: (i, 0)),  # x tile
                pl.BlockSpec((latent, input_dim), lambda i: (0, 0)),      # W (resident)
                pl.BlockSpec((1, latent), lambda i: (0, 0)),              # bias (resident)
            ],
            out_specs=pl.BlockSpec((tile_batch, input_dim), lambda i: (i, 0)),
        ),
        compiler_params=pltpu.CompilerParams(
            dimension_semantics=("parallel",),   # megacore split over batch tiles
            vmem_limit_bytes=vmem_limit,
        ),
        cost_estimate=cost,
    )(x_p, w, b2d)

    return out if padded_B == B else out[:B]


def reference_forward(x, w, b):
    latent = x.astype(jnp.float32) @ w.astype(jnp.float32).T + b.astype(jnp.float32)
    return latent @ w.astype(jnp.float32)


if __name__ == "__main__":
    # Small shapes consistent with Autoencoder(input_dim, latent).
    batch, input_dim, latent = 256, 128, 32

    key = jax.random.PRNGKey(0)
    kx, kw, kb = jax.random.split(key, 3)

    # Deterministic synthetic parameters, same shapes/layout as nn.Linear.
    bound = 1.0 / (input_dim ** 0.5)
    w = jax.random.uniform(kw, (latent, input_dim), jnp.float32, -bound, bound)
    b = jax.random.uniform(kb, (latent,), jnp.float32, -bound, bound)
    x = jax.random.normal(kx, (batch, input_dim), jnp.float32)

    # f32 path.
    recon = jax.block_until_ready(autoencoder_forward(x, w, b))
    ref = reference_forward(x, w, b)
    assert recon.shape == (batch, input_dim)
    assert jnp.allclose(recon, ref, atol=1e-4, rtol=1e-4)

    # Awkward (non-multiple) batch exercises the cdiv + pad path.
    x_odd = jax.random.normal(kx, (100, input_dim), jnp.float32)
    recon_odd = jax.block_until_ready(autoencoder_forward(x_odd, w, b))
    assert recon_odd.shape == (100, input_dim)
    assert jnp.allclose(recon_odd, reference_forward(x_odd, w, b),
                        atol=1e-4, rtol=1e-4)

    # bf16 activations/weights halve the dominant HBM stream; f32 accumulation
    # is kept inside the kernel, so tolerance is bf16-level.
    recon_bf16 = jax.block_until_ready(
        autoencoder_forward(x.astype(jnp.bfloat16), w.astype(jnp.bfloat16), b))
    assert jnp.allclose(recon_bf16.astype(jnp.float32), ref, atol=5e-2, rtol=5e-2)

    print("KERNEL_OK")
</pallas_src>

<mosaic_0001>
module attributes {stable_mosaic.version = 11 : i64} {
  func.func @_autoencoder_kernel(%arg0: i32, %arg1: memref<256x128xf32, #tpu.memory_space<vmem>>, %arg2: memref<32x128xf32, #tpu.memory_space<vmem>>, %arg3: memref<1x32xf32, #tpu.memory_space<vmem>>, %arg4: memref<256x128xf32, #tpu.memory_space<vmem>>) attributes {dimension_semantics = [#tpu.dimension_semantics<parallel>], iteration_bounds = array<i64: 1>, scalar_prefetch = 0 : i64, scratch_operands = 0 : i64, tpu.core_type = #tpu.core_type<tc>, window_params = [{transform_indices = @transform_0, window_bounds = array<i64: 256, 128>}, {pipeline_mode = #tpu.pipeline_mode<synchronous>, transform_indices = @transform_1, window_bounds = array<i64: 32, 128>}, {pipeline_mode = #tpu.pipeline_mode<synchronous>, transform_indices = @transform_2, window_bounds = array<i64: 1, 32>}, {transform_indices = @transform_3, window_bounds = array<i64: 256, 128>}]} {
    %c0 = arith.constant 0 : index
    %c0_0 = arith.constant 0 : index
    %0 = vector.load %arg1[%c0, %c0_0] : memref<256x128xf32, #tpu.memory_space<vmem>>, vector<256x128xf32>
    %c0_1 = arith.constant 0 : index
    %c0_2 = arith.constant 0 : index
    %1 = vector.load %arg2[%c0_1, %c0_2] : memref<32x128xf32, #tpu.memory_space<vmem>>, vector<32x128xf32>
    %c0_3 = arith.constant 0 : index
    %c0_4 = arith.constant 0 : index
    %2 = vector.load %arg3[%c0_3, %c0_4] : memref<1x32xf32, #tpu.memory_space<vmem>>, vector<1x32xf32>
    %cst = arith.constant dense<0.000000e+00> : vector<256x32xf32>
    %3 = tpu.matmul %0, %1, %cst {dimension_numbers = #tpu.dot_dimension_numbers<[1], [1], [0], [0], [0, 0, 1, 0], [], []>} : vector<256x128xf32>, vector<32x128xf32>, vector<256x32xf32> -> vector<256x32xf32>
    %4 = vector.broadcast %2 : vector<1x32xf32> to vector<256x32xf32>
    %5 = arith.addf %3, %4 : vector<256x32xf32>
    %cst_5 = arith.constant dense<0.000000e+00> : vector<256x128xf32>
    %6 = tpu.matmul %5, %1, %cst_5 {dimension_numbers = #tpu.dot_dimension_numbers<[1], [0], [0], [1], [0, 0, 1, 1], [], []>} : vector<256x32xf32>, vector<32x128xf32>, vector<256x128xf32> -> vector<256x128xf32>
    %c0_6 = arith.constant 0 : index
    %c0_7 = arith.constant 0 : index
    %7 = vector.load %arg4[%c0_6, %c0_7] : memref<256x128xf32, #tpu.memory_space<vmem>>, vector<256x128xf32>
    tpu.vector_store %arg4[%c0_6, %c0_7], %6 {strides = array<i32>} : memref<256x128xf32, #tpu.memory_space<vmem>>, vector<256x128xf32>,
    return
  }
  func.func @transform_0(%arg0: i32) -> (i32, i32) {
    %c0_i32 = arith.constant 0 : i32
    %c0_i32_0 = arith.constant 0 : i32
    return %arg0, %c0_i32 : i32, i32
  }
  func.func @transform_1(%arg0: i32) -> (i32, i32) {
    %c0_i32 = arith.constant 0 : i32
    %c0_i32_0 = arith.constant 0 : i32
    %c0_i32_1 = arith.constant 0 : i32
    return %c0_i32, %c0_i32_0 : i32, i32
  }
  func.func @transform_2(%arg0: i32) -> (i32, i32) {
    %c0_i32 = arith.constant 0 : i32
    %c0_i32_0 = arith.constant 0 : i32
    %c0_i32_1 = arith.constant 0 : i32
    return %c0_i32, %c0_i32_0 : i32, i32
  }
  func.func @transform_3(%arg0: i32) -> (i32, i32) {
    %c0_i32 = arith.constant 0 : i32
    %c0_i32_0 = arith.constant 0 : i32
    return %arg0, %c0_i32 : i32, i32
  }
}

</mosaic_0001>

<bundles_post_ra>
// kernel: tpu_custom_call.1
= control target key start
LH: loop header
LB: loop body
LE: loop exit
PB: predicated region body
PF: predicated region fallthrough
CT: control target
= control target key end

     0   :  { %8 = vsyncpa [#allocation3], 0  ;;  %s701_s0 = inlined_call_operand.hbm [shape: f32[256,128], index: 0, kind: input, shape index: {}]   ;;  %s702_s1 = inlined_call_operand.hbm [shape: f32[32,128], index: 1, kind: input, shape index: {}]   ;;  %s703_s2 = inlined_call_operand.vmem [shape: f32[1,32], index: 2, kind: input, shape index: {}]   ;;  %s704_s3 = inlined_call_operand.hbm [shape: f32[256,128], index: 3, kind: output, shape index: {}]  }
   0x1   :  { %9 = vsyncpa [#allocation6], 0 }
   0x2   :  { %10 = vsyncpa [#allocation4], 0  ;;  %s15_s14 = sshll.u32 %s701_s0, 4  ;;  %s586_s15 = smov [#allocation2]   ;;  %s16_s14 = int_to_ptr.hbm [resolvable:$true] %s15_s14 }
   0x3   :  { %s17_s16 = sshll.u32 %s586_s15, 4  ;;  %s28_s19 = sshll.u32 %s702_s1, 4  ;;  %s18_s16 = int_to_ptr.vmem [resolvable:$true] %s17_s16  ;;  %s29_s19 = int_to_ptr.hbm [resolvable:$true] %s28_s19 }
   0x4   :  { %s587_s20 = smov 128   ;;  %s588_s21 = smov 8  }
   0x5   :  { %23 = dma.hbm_to_vmem [thread:$0]  %s16_s14, 4096, %s18_s16, [#allocation3], %s587_s20, %s587_s20, %s588_s21  }
   0x6   :  { %s589_s22 = smov [#allocation5]  }
   0x7   :  { %s30_s23 = sshll.u32 %s589_s22, 4  ;;  %s31_s23 = int_to_ptr.vmem [resolvable:$true] %s30_s23 }
   0x8   :  { %36 = dma.hbm_to_vmem [thread:$0]  %s29_s19, 512, %s31_s23, [#allocation6], %s587_s20, %s587_s20, %s588_s21  }
   0x9   :  { %580 = dma.done.wait [#allocation3], 4096  }
   0xa   :  { %581 = vsyncadd [#allocation3], 4294963200 }
   0xb   :  { %582 = dma.done.wait [#allocation6], 512  }
   0xc   :  { %583 = vsyncadd [#allocation6], 4294966784  ;;  %v82_v0 = vld [vmem:[#allocation5 + $0x18] sm:$0xff]  ;;  %v81_v1 = vld [vmem:[#allocation5 + $0x10] sm:$0xff]  ;;  %vm200_vm0 = vcmask 261120   ;;  %s448_s27 = sshll.u32 %s704_s3, 4  ;;  %s449_s27 = int_to_ptr.hbm [resolvable:$true] %s448_s27 }
   0xd   :  { %99 = vmatpush.xpose.msra.mxu0 %v82_v0  ;;  %494 = vmatpush.xpose.msra.mxu2 %v82_v0  ;;  %v80_v2 = vld [vmem:[#allocation5 + $0x8] sm:$0xff]  ;;  %v79_v3 = vld [vmem:[#allocation5] sm:$0xff]  ;;  %v49_v8 = vld [vmem:[#allocation2 + $0x10] sm:$0xff] }
   0xe   :  { %309 = vmatpush.msra.mxu1 %v82_v0  ;;  %498 = vmatpush.msra.mxu3 %v82_v0  ;;  %v47_v4 = vld [vmem:[#allocation2] sm:$0xff]  ;;  %v48_v6 = vld [vmem:[#allocation2 + $0x8] sm:$0xff]  ;;  %v65_v9 = vld [vmem:[#allocation2 + $0x90] sm:$0xff] }
   0xf   :  { %v63_v5 = vld [vmem:[#allocation2 + $0x80] sm:$0xff]  ;;  %v64_v7 = vld [vmem:[#allocation2 + $0x88] sm:$0xff]  ;;  %v50_v10 = vld [vmem:[#allocation2 + $0x18] sm:$0xff] }
  0x10   :  { %310 = vmatpush.msra.mxu1 %v81_v1  ;;  %499 = vmatpush.msra.mxu3 %v81_v1  ;;  %v66_v11 = vld [vmem:[#allocation2 + $0x98] sm:$0xff]  ;;  %v51_v12 = vld [vmem:[#allocation2 + $0x20] sm:$0xff]  ;;  %v52_v14 = vld [vmem:[#allocation2 + $0x28] sm:$0xff] }
  0x11   :  { %100 = vmatpush.xpose.msra.mxu0 %v81_v1  ;;  %495 = vmatpush.xpose.msra.mxu2 %v81_v1  ;;  %v67_v13 = vld [vmem:[#allocation2 + $0xa0] sm:$0xff]  ;;  %v68_v15 = vld [vmem:[#allocation2 + $0xa8] sm:$0xff]  ;;  %v53_v16 = vld [vmem:[#allocation2 + $0x30] sm:$0xff] }
  0x12   :  { %311 = vmatpush.msra.mxu1 %v80_v2  ;;  %500 = vmatpush.msra.mxu3 %v80_v2  ;;  %v69_v17 = vld [vmem:[#allocation2 + $0xb0] sm:$0xff]  ;;  %v54_v18 = vld [vmem:[#allocation2 + $0x38] sm:$0xff]  ;;  %v55_v20 = vld [vmem:[#allocation2 + $0x40] sm:$0xff] }
  0x13   :  { %v70_v19 = vld [vmem:[#allocation2 + $0xb8] sm:$0xff]  ;;  %v71_v21 = vld [vmem:[#allocation2 + $0xc0] sm:$0xff]  ;;  %v56_v22 = vld [vmem:[#allocation2 + $0x48] sm:$0xff] }
  0x14   :  { %312 = vmatpush.msra.mxu1 %v79_v3  ;;  %501 = vmatpush.msra.mxu3 %v79_v3  ;;  %v72_v23 = vld [vmem:[#allocation2 + $0xc8] sm:$0xff]  ;;  %v57_v24 = vld [vmem:[#allocation2 + $0x50] sm:$0xff]  ;;  %v58_v26 = vld [vmem:[#allocation2 + $0x58] sm:$0xff] }
  0x15   :  { %101 = vmatpush.xpose.msra.mxu0 %v80_v2  ;;  %496 = vmatpush.xpose.msra.mxu2 %v80_v2  ;;  %v73_v25 = vld [vmem:[#allocation2 + $0xd0] sm:$0xff]  ;;  %v74_v27 = vld [vmem:[#allocation2 + $0xd8] sm:$0xff]  ;;  %v59_v28 = vld [vmem:[#allocation2 + $0x60] sm:$0xff] }
  0x16   :  { %v75_v29 = vld [vmem:[#allocation2 + $0xe0] sm:$0xff]  ;;  %v60_v30 = vld [vmem:[#allocation2 + $0x68] sm:$0xff]  ;;  %v61_v32 = vld [vmem:[#allocation2 + $0x70] sm:$0xff] }
  0x17   :  { %v76_v31 = vld [vmem:[#allocation2 + $0xe8] sm:$0xff]  ;;  %v77_v33 = vld [vmem:[#allocation2 + $0xf0] sm:$0xff]  ;;  %v62_v34 = vld [vmem:[#allocation2 + $0x78] sm:$0xff] }
  0x18   :  { %v78_v35 = vld [vmem:[#allocation2 + $0xf8] sm:$0xff]  ;;  %v626_v36 = vld [vmem:[%s703_s2] ss:$0 sm:$0xff]  ;;  %s590_s2 = smov [#allocation7]  }
  0x19   :  { %102 = vmatpush.xpose.msra.mxu0 %v79_v3  ;;  %497 = vmatpush.xpose.msra.mxu2 %v79_v3  ;;  %s446_s24 = sshll.u32 %s590_s2, 4  ;;  %s447_s24 = int_to_ptr.vmem [resolvable:$true] %s446_s24 }
  0x1c   :  { %103 = vmatmul.f32.vlgmr.msra.gmra.mxu0 %v47_v4  ;;  %151 = vmatmul.f32.vlgmr.msra.gmra.mxu2 %v63_v5 }
  0x24   :  { %106 = vmatmul.f32.gmra.mxu0 %v48_v6  ;;  %154 = vmatmul.f32.gmra.mxu2 %v64_v7 }
  0x2c   :  { %109 = vmatmul.f32.gmra.mxu0 %v49_v8  ;;  %157 = vmatmul.f32.gmra.mxu2 %v65_v9 }
  0x34   :  { %112 = vmatmul.f32.gmra.mxu0 %v50_v10  ;;  %160 = vmatmul.f32.gmra.mxu2 %v66_v11 }
  0x3c   :  { %115 = vmatmul.f32.gmra.mxu0 %v51_v12  ;;  %163 = vmatmul.f32.gmra.mxu2 %v67_v13 }
  0x44   :  { %118 = vmatmul.f32.gmra.mxu0 %v52_v14  ;;  %166 = vmatmul.f32.gmra.mxu2 %v68_v15 }
  0x4c   :  { %121 = vmatmul.f32.gmra.mxu0 %v53_v16  ;;  %169 = vmatmul.f32.gmra.mxu2 %v69_v17 }
  0x54   :  { %124 = vmatmul.f32.gmra.mxu0 %v54_v18  ;;  %172 = vmatmul.f32.gmra.mxu2 %v70_v19 }
  0x5c   :  { %127 = vmatmul.f32.gmra.mxu0 %v55_v20  ;;  %175 = vmatmul.f32.gmra.mxu2 %v71_v21 }
  0x64   :  { %130 = vmatmul.f32.gmra.mxu0 %v56_v22  ;;  %178 = vmatmul.f32.gmra.mxu2 %v72_v23 }
  0x6c   :  { %133 = vmatmul.f32.gmra.mxu0 %v57_v24  ;;  %181 = vmatmul.f32.gmra.mxu2 %v73_v25 }
  0x74   :  { %136 = vmatmul.f32.gmra.mxu0 %v58_v26  ;;  %184 = vmatmul.f32.gmra.mxu2 %v74_v27 }
  0x7c   :  { %139 = vmatmul.f32.gmra.mxu0 %v59_v28  ;;  %187 = vmatmul.f32.gmra.mxu2 %v75_v29 }
  0x84   :  { %142 = vmatmul.f32.gmra.mxu0 %v60_v30  ;;  %190 = vmatmul.f32.gmra.mxu2 %v76_v31 }
  0x8c   :  { %145 = vmatmul.f32.gmra.mxu0 %v61_v32  ;;  %193 = vmatmul.f32.gmra.mxu2 %v77_v33 }
  0x94   :  { %148 = vmatmul.f32.gmra.mxu0 %v62_v34  ;;  %196 = vmatmul.f32.gmra.mxu2 %v78_v35 }
  0x99   :  { %v104_v37 = vpop.f32.mrf.mxu0 }
  0x9a   :  { %v105_v38 = vadd.f32 %v626_v36, %v104_v37 }
  0x9c   :  { %462 = vmatmul.msk.f32.vlgmr.msra.gmra.mxu1 %vm200_vm0, %v105_v38 }
  0x9f   :  { %v630_v39 = vpop.f32.mrf.mxu2 }
  0xa0   :  { %v153_v38 = vadd.f32 %v626_v36, %v630_v39 }
  0xa1   :  { %v107_v40 = vpop.f32.mrf.mxu0 }
  0xa2   :  { %v108_v41 = vadd.f32 %v626_v36, %v107_v40 }
  0xa4   :  { %463 = vmatmul.msk.f32.gmra.mxu1 %vm200_vm0, %v108_v41 }
  0xa7   :  { %v155_v42 = vpop.f32.mrf.mxu2 }
  0xa8   :  { %v156_v43 = vadd.f32 %v626_v36, %v155_v42 }
  0xa9   :  { %v110_v44 = vpop.f32.mrf.mxu0 }
  0xaa   :  { %v111_v45 = vadd.f32 %v626_v36, %v110_v44  ;;  %479 = vmatmul.msk.f32.vlgmr.msra.gmra.mxu3 %vm200_vm0, %v156_v43 }
  0xac   :  { %464 = vmatmul.msk.f32.gmra.mxu1 %vm200_vm0, %v111_v45 }
  0xaf   :  { %v158_v46 = vpop.f32.mrf.mxu2 }
  0xb0   :  { %v159_v47 = vadd.f32 %v626_v36, %v158_v46 }
  0xb1   :  { %v113_v48 = vpop.f32.mrf.mxu0 }
  0xb2   :  { %v114_v49 = vadd.f32 %v626_v36, %v113_v48  ;;  %480 = vmatmul.msk.f32.gmra.mxu3 %vm200_vm0, %v159_v47 }
  0xb4   :  { %465 = vmatmul.msk.f32.gmra.mxu1 %vm200_vm0, %v114_v49 }
  0xb7   :  { %v161_v50 = vpop.f32.mrf.mxu2 }
  0xb8   :  { %v162_v51 = vadd.f32 %v626_v36, %v161_v50 }
  0xb9   :  { %v116_v52 = vpop.f32.mrf.mxu0 }
  0xba   :  { %v117_v53 = vadd.f32 %v626_v36, %v116_v52  ;;  %481 = vmatmul.msk.f32.gmra.mxu3 %vm200_vm0, %v162_v51 }
  0xbc   :  { %466 = vmatmul.msk.f32.gmra.mxu1 %vm200_vm0, %v117_v53 }
  0xbf   :  { %v164_v54 = vpop.f32.mrf.mxu2 }
  0xc0   :  { %v165_v55 = vadd.f32 %v626_v36, %v164_v54 }
  0xc1   :  { %v119_v56 = vpop.f32.mrf.mxu0 }
  0xc2   :  { %v120_v57 = vadd.f32 %v626_v36, %v119_v56  ;;  %482 = vmatmul.msk.f32.gmra.mxu3 %vm200_vm0, %v165_v55 }
  0xc4   :  { %467 = vmatmul.msk.f32.gmra.mxu1 %vm200_vm0, %v120_v57 }
  0xc7   :  { %v167_v58 = vpop.f32.mrf.mxu2 }
  0xc8   :  { %v168_v59 = vadd.f32 %v626_v36, %v167_v58 }
  0xc9   :  { %v122_v60 = vpop.f32.mrf.mxu0 }
  0xca   :  { %v123_v61 = vadd.f32 %v626_v36, %v122_v60  ;;  %483 = vmatmul.msk.f32.gmra.mxu3 %vm200_vm0, %v168_v59 }
  0xcc   :  { %468 = vmatmul.msk.f32.gmra.mxu1 %vm200_vm0, %v123_v61 }
  0xcf   :  { %v170_v62 = vpop.f32.mrf.mxu2 }
  0xd0   :  { %v171_v63 = vadd.f32 %v626_v36, %v170_v62 }
  0xd1   :  { %v125_v0 = vpop.f32.mrf.mxu0 }
  0xd2   :  { %v126_v1 = vadd.f32 %v626_v36, %v125_v0  ;;  %484 = vmatmul.msk.f32.gmra.mxu3 %vm200_vm0, %v171_v63 }
  0xd4   :  { %469 = vmatmul.msk.f32.gmra.mxu1 %vm200_vm0, %v126_v1 }
  0xd7   :  { %v173_v2 = vpop.f32.mrf.mxu2 }
  0xd8   :  { %v174_v3 = vadd.f32 %v626_v36, %v173_v2 }
  0xd9   :  { %v128_v4 = vpop.f32.mrf.mxu0 }
  0xda   :  { %v129_v5 = vadd.f32 %v626_v36, %v128_v4  ;;  %485 = vmatmul.msk.f32.gmra.mxu3 %vm200_vm0, %v174_v3 }
  0xdc   :  { %470 = vmatmul.msk.f32.gmra.mxu1 %vm200_vm0, %v129_v5 }
  0xdf   :  { %v176_v6 = vpop.f32.mrf.mxu2 }
  0xe0   :  { %v177_v7 = vadd.f32 %v626_v36, %v176_v6 }
  0xe1   :  { %v131_v8 = vpop.f32.mrf.mxu0 }
  0xe2   :  { %v132_v9 = vadd.f32 %v626_v36, %v131_v8  ;;  %486 = vmatmul.msk.f32.gmra.mxu3 %vm200_vm0, %v177_v7 }
  0xe4   :  { %471 = vmatmul.msk.f32.gmra.mxu1 %vm200_vm0, %v132_v9 }
  0xe7   :  { %v179_v10 = vpop.f32.mrf.mxu2 }
  0xe8   :  { %v180_v11 = vadd.f32 %v626_v36, %v179_v10 }
  0xe9   :  { %v134_v12 = vpop.f32.mrf.mxu0 }
  0xea   :  { %v135_v13 = vadd.f32 %v626_v36, %v134_v12  ;;  %487 = vmatmul.msk.f32.gmra.mxu3 %vm200_vm0, %v180_v11 }
  0xec   :  { %472 = vmatmul.msk.f32.gmra.mxu1 %vm200_vm0, %v135_v13 }
  0xef   :  { %v182_v14 = vpop.f32.mrf.mxu2 }
  0xf0   :  { %v183_v15 = vadd.f32 %v626_v36, %v182_v14 }
  0xf1   :  { %v137_v16 = vpop.f32.mrf.mxu0 }
  0xf2   :  { %v138_v17 = vadd.f32 %v626_v36, %v137_v16  ;;  %488 = vmatmul.msk.f32.gmra.mxu3 %vm200_vm0, %v183_v15 }
  0xf4   :  { %473 = vmatmul.msk.f32.gmra.mxu1 %vm200_vm0, %v138_v17 }
  0xf7   :  { %v185_v18 = vpop.f32.mrf.mxu2 }
  0xf8   :  { %v186_v19 = vadd.f32 %v626_v36, %v185_v18 }
  0xf9   :  { %v140_v20 = vpop.f32.mrf.mxu0 }
  0xfa   :  { %v141_v21 = vadd.f32 %v626_v36, %v140_v20  ;;  %489 = vmatmul.msk.f32.gmra.mxu3 %vm200_vm0, %v186_v19 }
  0xfc   :  { %474 = vmatmul.msk.f32.gmra.mxu1 %vm200_vm0, %v141_v21 }
  0xff   :  { %v188_v22 = vpop.f32.mrf.mxu2 }
 0x100   :  { %v189_v23 = vadd.f32 %v626_v36, %v188_v22 }
 0x101   :  { %v143_v24 = vpop.f32.mrf.mxu0 }
 0x102   :  { %v144_v25 = vadd.f32 %v626_v36, %v143_v24  ;;  %490 = vmatmul.msk.f32.gmra.mxu3 %vm200_vm0, %v189_v23 }
 0x104   :  { %475 = vmatmul.msk.f32.gmra.mxu1 %vm200_vm0, %v144_v25 }
 0x107   :  { %v191_v26 = vpop.f32.mrf.mxu2 }
 0x108   :  { %v192_v27 = vadd.f32 %v626_v36, %v191_v26 }
 0x109   :  { %v146_v28 = vpop.f32.mrf.mxu0 }
 0x10a   :  { %v147_v29 = vadd.f32 %v626_v36, %v146_v28  ;;  %491 = vmatmul.msk.f32.gmra.mxu3 %vm200_vm0, %v192_v27 }
 0x10c   :  { %476 = vmatmul.msk.f32.gmra.mxu1 %vm200_vm0, %v147_v29 }
 0x10f   :  { %v194_v30 = vpop.f32.mrf.mxu2 }
 0x110   :  { %v195_v31 = vadd.f32 %v626_v36, %v194_v30 }
 0x111   :  { %v149_v32 = vpop.f32.mrf.mxu0 }
 0x112   :  { %v150_v33 = vadd.f32 %v626_v36, %v149_v32  ;;  %492 = vmatmul.msk.f32.gmra.mxu3 %vm200_vm0, %v195_v31 }
 0x114   :  { %477 = vmatmul.msk.f32.gmra.mxu1 %vm200_vm0, %v150_v33 }
 0x117   :  { %v197_v34 = vpop.f32.mrf.mxu2 }
 0x118   :  { %v198_v35 = vadd.f32 %v626_v36, %v197_v34 }
 0x119   :  { %v314_v37 = vpop.f32.mrf.mxu1 }
 0x11a   :  { %410 = vst [vmem:[#allocation7] sm:$0xff] %v314_v37  ;;  %493 = vmatmul.msk.f32.gmra.mxu3 %vm200_vm0, %v198_v35 }
 0x11c   :  { %478 = vmatmul.msk.f32.gmra.mxu1 %vm200_vm0, %v153_v38 }
 0x121   :  { %v317_v40 = vpop.f32.mrf.mxu1 }
 0x122   :  { %411 = vst [vmem:[#allocation7 + $0x8] sm:$0xff] %v317_v40 }
 0x129   :  { %v320_v41 = vpop.f32.mrf.mxu1 }
 0x12a   :  { %412 = vst [vmem:[#allocation7 + $0x10] sm:$0xff] %v320_v41 }
 0x12d   :  { %v365_v42 = vpop.f32.mrf.mxu3 }
 0x12e   :  { %427 = vst [vmem:[#allocation7 + $0x88] sm:$0xff] %v365_v42 }
 0x131   :  { %v323_v43 = vpop.f32.mrf.mxu1 }
 0x132   :  { %413 = vst [vmem:[#allocation7 + $0x18] sm:$0xff] %v323_v43 }
 0x135   :  { %v368_v44 = vpop.f32.mrf.mxu3 }
 0x136   :  { %428 = vst [vmem:[#allocation7 + $0x90] sm:$0xff] %v368_v44 }
 0x139   :  { %v326_v45 = vpop.f32.mrf.mxu1 }
 0x13a   :  { %414 = vst [vmem:[#allocation7 + $0x20] sm:$0xff] %v326_v45 }
 0x13d   :  { %v371_v46 = vpop.f32.mrf.mxu3 }
 0x13e   :  { %429 = vst [vmem:[#allocation7 + $0x98] sm:$0xff] %v371_v46 }
 0x141   :  { %v329_v36 = vpop.f32.mrf.mxu1 }
 0x142   :  { %415 = vst [vmem:[#allocation7 + $0x28] sm:$0xff] %v329_v36 }
 0x145   :  { %v374_v39 = vpop.f32.mrf.mxu3 }
 0x146   :  { %430 = vst [vmem:[#allocation7 + $0xa0] sm:$0xff] %v374_v39 }
 0x149   :  { %v332_v47 = vpop.f32.mrf.mxu1 }
 0x14a   :  { %416 = vst [vmem:[#allocation7 + $0x30] sm:$0xff] %v332_v47 }
 0x14d   :  { %v377_v48 = vpop.f32.mrf.mxu3 }
 0x14e   :  { %431 = vst [vmem:[#allocation7 + $0xa8] sm:$0xff] %v377_v48 }
 0x151   :  { %v335_v49 = vpop.f32.mrf.mxu1 }
 0x152   :  { %417 = vst [vmem:[#allocation7 + $0x38] sm:$0xff] %v335_v49 }
 0x155   :  { %v380_v50 = vpop.f32.mrf.mxu3 }
 0x156   :  { %432 = vst [vmem:[#allocation7 + $0xb0] sm:$0xff] %v380_v50 }
 0x159   :  { %v338_v51 = vpop.f32.mrf.mxu1 }
 0x15a   :  { %418 = vst [vmem:[#allocation7 + $0x40] sm:$0xff] %v338_v51 }
 0x15d   :  { %v383_v52 = vpop.f32.mrf.mxu3 }
 0x15e   :  { %433 = vst [vmem:[#allocation7 + $0xb8] sm:$0xff] %v383_v52 }
 0x161   :  { %v341_v53 = vpop.f32.mrf.mxu1 }
 0x162   :  { %419 = vst [vmem:[#allocation7 + $0x48] sm:$0xff] %v341_v53 }
 0x165   :  { %v386_v54 = vpop.f32.mrf.mxu3 }
 0x166   :  { %434 = vst [vmem:[#allocation7 + $0xc0] sm:$0xff] %v386_v54 }
 0x169   :  { %v344_v55 = vpop.f32.mrf.mxu1 }
 0x16a   :  { %420 = vst [vmem:[#allocation7 + $0x50] sm:$0xff] %v344_v55 }
 0x16d   :  { %v389_v56 = vpop.f32.mrf.mxu3 }
 0x16e   :  { %435 = vst [vmem:[#allocation7 + $0xc8] sm:$0xff] %v389_v56 }
 0x171   :  { %v347_v57 = vpop.f32.mrf.mxu1 }
 0x172   :  { %421 = vst [vmem:[#allocation7 + $0x58] sm:$0xff] %v347_v57 }
 0x175   :  { %v392_v58 = vpop.f32.mrf.mxu3 }
 0x176   :  { %436 = vst [vmem:[#allocation7 + $0xd0] sm:$0xff] %v392_v58 }
 0x179   :  { %v350_v59 = vpop.f32.mrf.mxu1 }
 0x17a   :  { %422 = vst [vmem:[#allocation7 + $0x60] sm:$0xff] %v350_v59 }
 0x17d   :  { %v395_v60 = vpop.f32.mrf.mxu3 }
 0x17e   :  { %437 = vst [vmem:[#allocation7 + $0xd8] sm:$0xff] %v395_v60 }
 0x181   :  { %v353_v61 = vpop.f32.mrf.mxu1 }
 0x182   :  { %423 = vst [vmem:[#allocation7 + $0x68] sm:$0xff] %v353_v61 }
 0x185   :  { %v398_v62 = vpop.f32.mrf.mxu3 }
 0x186   :  { %438 = vst [vmem:[#allocation7 + $0xe0] sm:$0xff] %v398_v62 }
 0x189   :  { %v356_v63 = vpop.f32.mrf.mxu1 }
 0x18a   :  { %424 = vst [vmem:[#allocation7 + $0x70] sm:$0xff] %v356_v63 }
 0x18d   :  { %v401_v0 = vpop.f32.mrf.mxu3 }
 0x18e   :  { %439 = vst [vmem:[#allocation7 + $0xe8] sm:$0xff] %v401_v0 }
 0x191   :  { %v359_v1 = vpop.f32.mrf.mxu1 }
 0x192   :  { %425 = vst [vmem:[#allocation7 + $0x78] sm:$0xff] %v359_v1 }
 0x195   :  { %v404_v2 = vpop.f32.mrf.mxu3 }
 0x196   :  { %440 = vst [vmem:[#allocation7 + $0xf0] sm:$0xff] %v404_v2 }
 0x199   :  { %v362_v3 = vpop.f32.mrf.mxu1 }
 0x19a   :  { %426 = vst [vmem:[#allocation7 + $0x80] sm:$0xff] %v362_v3 }
 0x19d   :  { %v407_v4 = vpop.f32.mrf.mxu3 }
 0x19e   :  { %441 = vst [vmem:[#allocation7 + $0xf8] sm:$0xff] %v407_v4 }
 0x19f   :  { %454 = dma.vmem_to_hbm [thread:$0]  %s447_s24, 4096, %s449_s27, [#allocation4], %s587_s20, %s587_s20, %s588_s21  }
 0x1a0   :  { %584 = dma.done.wait [#allocation4], 4096  }
 0x1a1   :  { %585 = vsyncadd [#allocation4], 4294963200 }
 0x1a2   :  { %459 = vsyncpa [#allocation3], 1 }
 0x1a3   :  { %460 = vsyncpa [#allocation6], 1 }
 0x1a4   :  { %461 = vsyncpa [#allocation4], 1 }

</bundles_post_ra>
